<compile_context>
chip_gen: v7x
topology: tpu7x:2x2x1
jax: 0.10.0
libtpu: 0.0.40
codegen_flags: <defaults>
</compile_context>

<pallas_src>
import functools

import jax
import jax.numpy as jnp
from jax.experimental import pallas as pl
from jax.experimental.pallas import tpu as pltpu

ATOM_PAD = 128  # n_atoms (51) padded to one full 128-lane group


def _round_up(x, m):
    return (x + m - 1) // m * m


def _dueling_head_kernel(x_ref, wh_ref, bh_ref, wa_ref, ba_ref, wv_ref, bv_ref,
                         out_ref, *, output_size, hp):
    """Fused dueling distributional head for one batch tile.

    x_ref : [TB, Dp]              bf16  (flattened, zero-padded input)
    wh_ref: [Dp, 2*Hp]            bf16  (adv-hidden lanes [0:Hp] | value-hidden [Hp:2Hp])
    bh_ref: [1, 2*Hp]             f32
    wa_ref: [Hp, output_size*128] bf16  (advantage out; one 128-lane group per action)
    ba_ref: [1, output_size*128]  f32   (advantage_bias folded in)
    wv_ref: [Hp, 128]             bf16  (value out)
    bv_ref: [1, 128]              f32
    out_ref:[TB, output_size*128] f32   (lane-dense; sliced to n_atoms outside)
    """
    A = ATOM_PAD

    # Fused hidden layer for both branches: one MXU pass, f32 accumulation.
    h = jnp.dot(x_ref[...], wh_ref[...], preferred_element_type=jnp.float32)
    h = jnp.maximum(h + bh_ref[...], 0.0).astype(jnp.bfloat16)   # [TB, 2*Hp]

    # Second layer: two dense matmuls (no zero-block waste).  Slices at Hp are
    # always 128-lane aligned -> whole-vreg picks, no masking.
    adv = jnp.dot(h[:, :hp], wa_ref[...],
                  preferred_element_type=jnp.float32) + ba_ref[...]   # [TB, O*128]
    val = jnp.dot(h[:, hp:], wv_ref[...],
                  preferred_element_type=jnp.float32) + bv_ref[...]   # [TB, 128]

    # Mean over the action dim via 128-aligned whole-vreg slices (no cross-lane work).
    adv_sum = adv[:, 0:A]
    for a in range(1, output_size):
        adv_sum = adv_sum + adv[:, a * A:(a + 1) * A]
    corr = val - adv_sum * (1.0 / output_size)      # value - mean(advantage)

    # out = advantage + (value - mean): one lane-dense store of the whole slab.
    out_ref[...] = (adv + jnp.tile(corr, (1, output_size))).astype(out_ref.dtype)


def prepare_params(params, *, in_features, hidden_size, output_size, n_atoms):
    """One-time packing of PyTorch-layout params (hoisted out of the hot path)."""
    # TODO(synk): for noisy=1, fold (weight_mu + weight_sigma*weight_epsilon) /
    # (bias_mu + bias_sigma*bias_epsilon) here instead of the plain weights.
    w1, b1, w2, b2, w3, b3, w4, b4, adv_bias = params
    A = ATOM_PAD
    H = hidden_size
    Hp = _round_up(H, 128)
    Dp = _round_up(in_features, 128)

    # Fused hidden weights: [Dp, 2*Hp] = [adv_hidden | value_hidden], each branch
    # padded to a 128-lane multiple so later slices are lane-group aligned.
    wh = jnp.zeros((Dp, 2 * Hp), jnp.float32)
    wh = wh.at[:in_features, :H].set(w1.T)
    wh = wh.at[:in_features, Hp:Hp + H].set(w3.T)
    bh = jnp.zeros((1, 2 * Hp), jnp.float32)
    bh = bh.at[0, :H].set(b1)
    bh = bh.at[0, Hp:Hp + H].set(b3)

    # Advantage output weights: [Hp, output_size*128]; each 128-lane group holds
    # one action's atoms (padded lanes stay zero -> zero outputs, sliced off later).
    wo_adv = jnp.zeros((Hp, output_size * A), jnp.float32)
    bo_adv = jnp.zeros((1, output_size * A), jnp.float32)
    w2t = w2.T                                      # [H, output_size*n_atoms]
    for a in range(output_size):
        wo_adv = wo_adv.at[:H, a * A:a * A + n_atoms].set(
            w2t[:, a * n_atoms:(a + 1) * n_atoms])
        bo_adv = bo_adv.at[0, a * A:a * A + n_atoms].set(
            b2[a * n_atoms:(a + 1) * n_atoms] + adv_bias)

    # Value output weights: [Hp, 128].
    wo_val = jnp.zeros((Hp, A), jnp.float32)
    wo_val = wo_val.at[:H, :n_atoms].set(w4.T)
    bo_val = jnp.zeros((1, A), jnp.float32)
    bo_val = bo_val.at[0, :n_atoms].set(b4)

    return {
        "wh": wh.astype(jnp.bfloat16), "bh": bh,
        "wo_adv": wo_adv.astype(jnp.bfloat16), "bo_adv": bo_adv,
        "wo_val": wo_val.astype(jnp.bfloat16), "bo_val": bo_val,
        "Dp": Dp, "Hp": Hp, "in_features": in_features,
        "hidden_size": hidden_size, "output_size": output_size,
        "n_atoms": n_atoms,
    }


def dueling_head_forward(x_nchw, packed):
    """Run the fused head. x_nchw: [B, C, H, W] f32 -> [B, output_size, n_atoms]."""
    A = ATOM_PAD
    output_size = packed["output_size"]
    n_atoms = packed["n_atoms"]
    Hp = packed["Hp"]
    Dp = packed["Dp"]
    D = packed["in_features"]

    B = x_nchw.shape[0]
    x = x_nchw.reshape(B, -1)                       # nn.Flatten(-3, -1)
    assert x.shape[1] == D

    # Batch tiling: TB rows per grid step; pad batch so the grid divides evenly.
    B8 = _round_up(max(B, 1), 8)
    TB = min(256, B8)                               # 256 fills the v6e/v7x MXU rows
    Bp = _round_up(B8, TB)

    # bf16 input halves the HBM->VMEM bytes; zero-pad batch rows and feature lanes.
    x = jnp.pad(x.astype(jnp.bfloat16), ((0, Bp - B), (0, Dp - D)))

    n_out = output_size * A
    kernel = functools.partial(_dueling_head_kernel,
                               output_size=output_size, hp=Hp)

    out = pl.pallas_call(
        kernel,
        out_shape=jax.ShapeDtypeStruct((Bp, n_out), jnp.float32),
        grid_spec=pltpu.PrefetchScalarGridSpec(
            num_scalar_prefetch=0,
            grid=(Bp // TB,),
            in_specs=[
                pl.BlockSpec((TB, Dp), lambda i: (i, 0)),
                # Weights/biases: constant block index -> resident across grid steps.
                pl.BlockSpec((Dp, 2 * Hp), lambda i: (0, 0)),
                pl.BlockSpec((1, 2 * Hp), lambda i: (0, 0)),
                pl.BlockSpec((Hp, n_out), lambda i: (0, 0)),
                pl.BlockSpec((1, n_out), lambda i: (0, 0)),
                pl.BlockSpec((Hp, A), lambda i: (0, 0)),
                pl.BlockSpec((1, A), lambda i: (0, 0)),
            ],
            out_specs=pl.BlockSpec((TB, n_out), lambda i: (i, 0)),
        ),
        compiler_params=pltpu.CompilerParams(
            dimension_semantics=("parallel",)),     # v7x: shard batch over 2 TCs
    )(x, packed["wh"], packed["bh"], packed["wo_adv"], packed["bo_adv"],
      packed["wo_val"], packed["bo_val"])

    # Lane-dense slab -> [B, output_size, n_atoms] (cheap XLA slice outside kernel).
    return out[:B].reshape(B, output_size, A)[:, :, :n_atoms]


def _linear_params(key, in_features, out_features):
    """Deterministic nn.Linear-style init: U(-1/sqrt(in), 1/sqrt(in))."""
    kw, kb = jax.random.split(key)
    bound = 1.0 / float(in_features) ** 0.5
    w = jax.random.uniform(kw, (out_features, in_features), jnp.float32,
                           -bound, bound)
    b = jax.random.uniform(kb, (out_features,), jnp.float32, -bound, bound)
    return w, b


def _ref_forward(x_nchw, params, *, output_size, n_atoms):
    """Pure-JAX f32 reference mirroring the PyTorch forward."""
    w1, b1, w2, b2, w3, b3, w4, b4, adv_bias = params
    B = x_nchw.shape[0]
    x = x_nchw.reshape(B, -1)
    h_a = jnp.maximum(x @ w1.T + b1, 0.0)
    adv = (h_a @ w2.T + b2).reshape(B, output_size, n_atoms) + adv_bias
    h_v = jnp.maximum(x @ w3.T + b3, 0.0)
    val = (h_v @ w4.T + b4).reshape(B, 1, n_atoms)
    return val + (adv - adv.mean(axis=1, keepdims=True))


if __name__ == "__main__":
    # Small, module-consistent shapes.
    input_channels = 4
    Himg = Wimg = 4
    pixels = Himg * Wimg          # 16
    output_size = 6
    n_atoms = 51
    hidden_size = 32
    batch = 2
    D = pixels * input_channels   # 64

    key = jax.random.PRNGKey(0)
    k_x, k1, k2, k3, k4 = jax.random.split(key, 5)

    # linears[0..3]: (D->hidden), (hidden->out*atoms), (D->hidden), (hidden->atoms)
    w1, b1 = _linear_params(k1, D, hidden_size)
    w2, b2 = _linear_params(k2, hidden_size, output_size * n_atoms)
    w3, b3 = _linear_params(k3, D, hidden_size)
    w4, b4 = _linear_params(k4, hidden_size, n_atoms)
    adv_bias = jnp.zeros((n_atoms,), jnp.float32)   # advantage_bias parameter
    params = (w1, b1, w2, b2, w3, b3, w4, b4, adv_bias)

    packed = prepare_params(params, in_features=D, hidden_size=hidden_size,
                            output_size=output_size, n_atoms=n_atoms)

    x = jax.random.normal(k_x, (batch, input_channels, Himg, Wimg), jnp.float32)

    out = dueling_head_forward(x, packed)
    out = jax.block_until_ready(out)

    ref = _ref_forward(x, params, output_size=output_size, n_atoms=n_atoms)
    assert out.shape == (batch, output_size, n_atoms)
    # bf16 matmul inputs with f32 accumulation -> relaxed tolerance vs f32 reference.
    assert jnp.allclose(out, ref, atol=5e-2, rtol=5e-2), (
        "mismatch vs reference; max abs err = "
        f"{float(jnp.max(jnp.abs(out - ref)))}")

    print("KERNEL_OK")
</pallas_src>

<mosaic_0001>
module attributes {stable_mosaic.version = 11 : i64} {
  func.func @_dueling_head_kernel(%arg0: i32, %arg1: memref<8x128xbf16, #tpu.memory_space<vmem>>, %arg2: memref<128x256xbf16, #tpu.memory_space<vmem>>, %arg3: memref<1x256xf32, #tpu.memory_space<vmem>>, %arg4: memref<128x768xbf16, #tpu.memory_space<vmem>>, %arg5: memref<1x768xf32, #tpu.memory_space<vmem>>, %arg6: memref<128x128xbf16, #tpu.memory_space<vmem>>, %arg7: memref<1x128xf32, #tpu.memory_space<vmem>>, %arg8: memref<8x768xf32, #tpu.memory_space<vmem>>) attributes {dimension_semantics = [#tpu.dimension_semantics<parallel>], iteration_bounds = array<i64: 1>, scalar_prefetch = 0 : i64, scratch_operands = 0 : i64, tpu.core_type = #tpu.core_type<tc>, window_params = [{transform_indices = @transform_0, window_bounds = array<i64: 8, 128>}, {pipeline_mode = #tpu.pipeline_mode<synchronous>, transform_indices = @transform_1, window_bounds = array<i64: 128, 256>}, {pipeline_mode = #tpu.pipeline_mode<synchronous>, transform_indices = @transform_2, window_bounds = array<i64: 1, 256>}, {pipeline_mode = #tpu.pipeline_mode<synchronous>, transform_indices = @transform_3, window_bounds = array<i64: 128, 768>}, {pipeline_mode = #tpu.pipeline_mode<synchronous>, transform_indices = @transform_4, window_bounds = array<i64: 1, 768>}, {pipeline_mode = #tpu.pipeline_mode<synchronous>, transform_indices = @transform_5, window_bounds = array<i64: 128, 128>}, {pipeline_mode = #tpu.pipeline_mode<synchronous>, transform_indices = @transform_6, window_bounds = array<i64: 1, 128>}, {transform_indices = @transform_7, window_bounds = array<i64: 8, 768>}]} {
    %c0 = arith.constant 0 : index
    %c0_0 = arith.constant 0 : index
    %0 = vector.load %arg1[%c0, %c0_0] : memref<8x128xbf16, #tpu.memory_space<vmem>>, vector<8x128xbf16>
    %c0_1 = arith.constant 0 : index
    %c0_2 = arith.constant 0 : index
    %1 = vector.load %arg2[%c0_1, %c0_2] : memref<128x256xbf16, #tpu.memory_space<vmem>>, vector<128x256xbf16>
    %cst = arith.constant dense<0.000000e+00> : vector<8x256xf32>
    %2 = tpu.matmul %0, %1, %cst {dimension_numbers = #tpu.dot_dimension_numbers<[1], [0], [0], [1], [0, 0, 1, 1], [], []>} : vector<8x128xbf16>, vector<128x256xbf16>, vector<8x256xf32> -> vector<8x256xf32>
    %c0_3 = arith.constant 0 : index
    %c0_4 = arith.constant 0 : index
    %3 = vector.load %arg3[%c0_3, %c0_4] : memref<1x256xf32, #tpu.memory_space<vmem>>, vector<1x256xf32>
    %4 = vector.broadcast %3 : vector<1x256xf32> to vector<8x256xf32>
    %5 = arith.addf %2, %4 : vector<8x256xf32>
    %cst_5 = arith.constant 0.000000e+00 : f32
    %6 = vector.broadcast %cst_5 : f32 to vector<8x256xf32>
    %7 = arith.maximumf %5, %6 : vector<8x256xf32>
    %8 = arith.truncf %7 : vector<8x256xf32> to vector<8x256xbf16>
    %9 = vector.extract_strided_slice %8 {offsets = [0, 0], sizes = [8, 128], strides = [1, 1]} : vector<8x256xbf16> to vector<8x128xbf16>
    %c0_6 = arith.constant 0 : index
    %c0_7 = arith.constant 0 : index
    %10 = vector.load %arg4[%c0_6, %c0_7] : memref<128x768xbf16, #tpu.memory_space<vmem>>, vector<128x768xbf16>
    %cst_8 = arith.constant dense<0.000000e+00> : vector<8x768xf32>
    %11 = tpu.matmul %9, %10, %cst_8 {dimension_numbers = #tpu.dot_dimension_numbers<[1], [0], [0], [1], [0, 0, 1, 1], [], []>} : vector<8x128xbf16>, vector<128x768xbf16>, vector<8x768xf32> -> vector<8x768xf32>
    %c0_9 = arith.constant 0 : index
    %c0_10 = arith.constant 0 : index
    %12 = vector.load %arg5[%c0_9, %c0_10] : memref<1x768xf32, #tpu.memory_space<vmem>>, vector<1x768xf32>
    %13 = vector.broadcast %12 : vector<1x768xf32> to vector<8x768xf32>
    %14 = arith.addf %11, %13 : vector<8x768xf32>
    %15 = vector.extract_strided_slice %8 {offsets = [0, 128], sizes = [8, 128], strides = [1, 1]} : vector<8x256xbf16> to vector<8x128xbf16>
    %c0_11 = arith.constant 0 : index
    %c0_12 = arith.constant 0 : index
    %16 = vector.load %arg6[%c0_11, %c0_12] : memref<128x128xbf16, #tpu.memory_space<vmem>>, vector<128x128xbf16>
    %cst_13 = arith.constant dense<0.000000e+00> : vector<8x128xf32>
    %17 = tpu.matmul %15, %16, %cst_13 {dimension_numbers = #tpu.dot_dimension_numbers<[1], [0], [0], [1], [0, 0, 1, 1], [], []>} : vector<8x128xbf16>, vector<128x128xbf16>, vector<8x128xf32> -> vector<8x128xf32>
    %c0_14 = arith.constant 0 : index
    %c0_15 = arith.constant 0 : index
    %18 = vector.load %arg7[%c0_14, %c0_15] : memref<1x128xf32, #tpu.memory_space<vmem>>, vector<1x128xf32>
    %19 = vector.broadcast %18 : vector<1x128xf32> to vector<8x128xf32>
    %20 = arith.addf %17, %19 : vector<8x128xf32>
    %21 = vector.extract_strided_slice %14 {offsets = [0, 0], sizes = [8, 128], strides = [1, 1]} : vector<8x768xf32> to vector<8x128xf32>
    %22 = vector.extract_strided_slice %14 {offsets = [0, 128], sizes = [8, 128], strides = [1, 1]} : vector<8x768xf32> to vector<8x128xf32>
    %23 = arith.addf %21, %22 : vector<8x128xf32>
    %24 = vector.extract_strided_slice %14 {offsets = [0, 256], sizes = [8, 128], strides = [1, 1]} : vector<8x768xf32> to vector<8x128xf32>
    %25 = arith.addf %23, %24 : vector<8x128xf32>
    %26 = vector.extract_strided_slice %14 {offsets = [0, 384], sizes = [8, 128], strides = [1, 1]} : vector<8x768xf32> to vector<8x128xf32>
    %27 = arith.addf %25, %26 : vector<8x128xf32>
    %28 = vector.extract_strided_slice %14 {offsets = [0, 512], sizes = [8, 128], strides = [1, 1]} : vector<8x768xf32> to vector<8x128xf32>
    %29 = arith.addf %27, %28 : vector<8x128xf32>
    %30 = vector.extract_strided_slice %14 {offsets = [0, 640], sizes = [8, 128], strides = [1, 1]} : vector<8x768xf32> to vector<8x128xf32>
    %31 = arith.addf %29, %30 : vector<8x128xf32>
    %cst_16 = arith.constant 0.166666672 : f32
    %32 = vector.broadcast %cst_16 : f32 to vector<8x128xf32>
    %33 = arith.mulf %31, %32 : vector<8x128xf32>
    %34 = arith.subf %20, %33 : vector<8x128xf32>
    %35 = tpu.concatenate %34, %34, %34, %34, %34, %34 in 1 : vector<8x128xf32>, vector<8x128xf32>, vector<8x128xf32>, vector<8x128xf32>, vector<8x128xf32>, vector<8x128xf32> -> vector<8x768xf32>
    %36 = arith.addf %14, %35 : vector<8x768xf32>
    %c0_17 = arith.constant 0 : index
    %c0_18 = arith.constant 0 : index
    %37 = vector.load %arg8[%c0_17, %c0_18] : memref<8x768xf32, #tpu.memory_space<vmem>>, vector<8x768xf32>
    tpu.vector_store %arg8[%c0_17, %c0_18], %36 {strides = array<i32>} : memref<8x768xf32, #tpu.memory_space<vmem>>, vector<8x768xf32>,
    return
  }
  func.func @transform_0(%arg0: i32) -> (i32, i32) {
    %c0_i32 = arith.constant 0 : i32
    %c0_i32_0 = arith.constant 0 : i32
    return %arg0, %c0_i32 : i32, i32
  }
  func.func @transform_1(%arg0: i32) -> (i32, i32) {
    %c0_i32 = arith.constant 0 : i32
    %c0_i32_0 = arith.constant 0 : i32
    %c0_i32_1 = arith.constant 0 : i32
    return %c0_i32, %c0_i32_0 : i32, i32
  }
  func.func @transform_2(%arg0: i32) -> (i32, i32) {
    %c0_i32 = arith.constant 0 : i32
    %c0_i32_0 = arith.constant 0 : i32
    %c0_i32_1 = arith.constant 0 : i32
    return %c0_i32, %c0_i32_0 : i32, i32
  }
  func.func @transform_3(%arg0: i32) -> (i32, i32) {
    %c0_i32 = arith.constant 0 : i32
    %c0_i32_0 = arith.constant 0 : i32
    %c0_i32_1 = arith.constant 0 : i32
    return %c0_i32, %c0_i32_0 : i32, i32
  }
  func.func @transform_4(%arg0: i32) -> (i32, i32) {
    %c0_i32 = arith.constant 0 : i32
    %c0_i32_0 = arith.constant 0 : i32
    %c0_i32_1 = arith.constant 0 : i32
    return %c0_i32, %c0_i32_0 : i32, i32
  }
  func.func @transform_5(%arg0: i32) -> (i32, i32) {
    %c0_i32 = arith.constant 0 : i32
    %c0_i32_0 = arith.constant 0 : i32
    %c0_i32_1 = arith.constant 0 : i32
    return %c0_i32, %c0_i32_0 : i32, i32
  }
  func.func @transform_6(%arg0: i32) -> (i32, i32) {
    %c0_i32 = arith.constant 0 : i32
    %c0_i32_0 = arith.constant 0 : i32
    %c0_i32_1 = arith.constant 0 : i32
    return %c0_i32, %c0_i32_0 : i32, i32
  }
  func.func @transform_7(%arg0: i32) -> (i32, i32) {
    %c0_i32 = arith.constant 0 : i32
    %c0_i32_0 = arith.constant 0 : i32
    return %arg0, %c0_i32 : i32, i32
  }
}

</mosaic_0001>

<bundles_post_ra>
// kernel: tpu_custom_call.1
= control target key start
LH: loop header
LB: loop body
LE: loop exit
PB: predicated region body
PF: predicated region fallthrough
CT: control target
= control target key end

     0   :  { %12 = vsyncpa [#allocation3], 0  ;;  %s1311_s0 = inlined_call_operand.hbm [shape: bf16[8,128], index: 0, kind: input, shape index: {}]   ;;  %s1312_s1 = inlined_call_operand.hbm [shape: bf16[128,256], index: 1, kind: input, shape index: {}]   ;;  %s1313_s2 = inlined_call_operand.vmem [shape: f32[1,256], index: 2, kind: input, shape index: {}]   ;;  %s1314_s3 = inlined_call_operand.hbm [shape: bf16[128,768], index: 3, kind: input, shape index: {}]   ;;  %s1315_s4 = inlined_call_operand.vmem [shape: f32[1,768], index: 4, kind: input, shape index: {}]   ;;  %s1316_s5 = inlined_call_operand.hbm [shape: bf16[128,128], index: 5, kind: input, shape index: {}]   ;;  %s1317_s6 = inlined_call_operand.vmem [shape: f32[1,128], index: 6, kind: input, shape index: {}]   ;;  %s1318_s7 = inlined_call_operand.hbm [shape: f32[8,768], index: 7, kind: output, shape index: {}]  }
   0x1   :  { %13 = vsyncpa [#allocation6], 0 }
   0x2   :  { %14 = vsyncpa [#allocation9], 0 }
   0x3   :  { %15 = vsyncpa [#allocation4], 0  ;;  %s1163_s24 = smov [#allocation5]   ;;  %s1045_s28 = scalar_lea.hbm %s1312_s1, 2048 }
   0x4   :  { %s31_s25 = sshll.u32 %s1163_s24, 4  ;;  %p1046_p0 = scmp.ne.s32.totalorder %s1312_s1, %s1045_s28  ;;  %s32_s25 = int_to_ptr.vmem [resolvable:$true] %s31_s25 }
   0x5   :  { %p1049_p1 = scmp.lt.u32.totalorder %s1045_s28, %s1312_s1 }
   0x7   :  { %p1051_p2 = pnand %p1049_p1, %p1046_p0 }
   0x9   :  { %1054 = shalt.err (!%p1051_p2)
}
   0xa   :  { %s1055_s10 = scalar_lea.vmem %s32_s25, 2048  ;;  %p1060_p4 = scmp.lt.s32.totalorder %s32_s25, %s32_s25 }
   0xb   :  { %p1056_p3 = scmp.ne.s32.totalorder %s32_s25, %s1055_s10  ;;  %p1061_p5 = scmp.lt.s32.totalorder %s1055_s10, %s1055_s10 }
   0xd   :  { %p1062_p6 = por %p1061_p5, %p1060_p4 }
   0xf   :  { %p1063_p7 = pnand %p1062_p6, %p1056_p3 }
  0x11   :  { %1066 = shalt.err (!%p1063_p7)
}
  0x12   :  { %s1164_s11 = smov 128   ;;  %s1165_s12 = smov 8  }
  0x13   :  { %37 = dma.hbm_to_vmem [thread:$0]  %s1312_s1, 2048, %s32_s25, [#allocation6], %s1164_s11, %s1164_s11, %s1165_s12  }
  0x14   :  { %s1166_s15 = smov [#allocation2]   ;;  %s1167_s17 = smov [#allocation7]  }
  0x15   :  { %s22_s16 = sshll.u32 %s1166_s15, 4  ;;  %s45_s18 = sshll.u32 %s1167_s17, 4  ;;  %s23_s16 = int_to_ptr.vmem [resolvable:$true] %s22_s16  ;;  %s46_s18 = int_to_ptr.vmem [resolvable:$true] %s45_s18 }
  0x16   :  { %s1067_s21 = scalar_lea.hbm %s1311_s0, 64 }
  0x17   :  { %p1068_p8 = scmp.ne.s32.totalorder %s1311_s0, %s1067_s21  ;;  %p1071_p9 = scmp.lt.u32.totalorder %s1067_s21, %s1311_s0 }
  0x19   :  { %p1073_p10 = pnand %p1071_p9, %p1068_p8 }
  0x1b   :  { %1076 = shalt.err (!%p1073_p10)
}
  0x1c   :  { %s1077_s1 = scalar_lea.vmem %s23_s16, 64  ;;  %p1082_p12 = scmp.lt.s32.totalorder %s23_s16, %s23_s16 }
  0x1d   :  { %p1078_p11 = scmp.ne.s32.totalorder %s23_s16, %s1077_s1  ;;  %p1083_p13 = scmp.lt.s32.totalorder %s1077_s1, %s1077_s1 }
  0x1f   :  { %p1084_p0 = por %p1083_p13, %p1082_p12 }
  0x21   :  { %p1085_p1 = pnand %p1084_p0, %p1078_p11 }
  0x23   :  { %1088 = shalt.err (!%p1085_p1)
}
  0x24   :  { %25 = dma.hbm_to_vmem [thread:$0]  %s1311_s0, 64, %s23_s16, [#allocation3]  }
  0x25   :  { %s1089_s30 = scalar_lea.hbm %s1314_s3, 6144 }
  0x26   :  { %p1090_p2 = scmp.ne.s32.totalorder %s1314_s3, %s1089_s30  ;;  %p1093_p3 = scmp.lt.u32.totalorder %s1089_s30, %s1314_s3 }
  0x28   :  { %p1095_p4 = pnand %p1093_p3, %p1090_p2 }
  0x2a   :  { %1098 = shalt.err (!%p1095_p4)
}
  0x2b   :  { %s1099_s12 = scalar_lea.vmem %s46_s18, 6144  ;;  %p1104_p6 = scmp.lt.s32.totalorder %s46_s18, %s46_s18 }
  0x2c   :  { %p1100_p5 = scmp.ne.s32.totalorder %s46_s18, %s1099_s12  ;;  %p1105_p7 = scmp.lt.s32.totalorder %s1099_s12, %s1099_s12 }
  0x2e   :  { %p1106_p8 = por %p1105_p7, %p1104_p6 }
  0x30   :  { %p1107_p9 = pnand %p1106_p8, %p1100_p5 }
  0x32   :  { %1110 = shalt.err (!%p1107_p9)
}
  0x33   :  { %s1168_s0 = smov 384   ;;  %s1169_s13 = smov 24  }
  0x34   :  { %51 = dma.hbm_to_vmem [thread:$0]  %s1314_s3, 6144, %s46_s18, [#allocation6], %s1168_s0, %s1168_s0, %s1169_s13  }
  0x35   :  { %s1170_s16 = smov [#allocation8]   ;;  %s1111_s21 = scalar_lea.hbm %s1316_s5, 1024 }
  0x36   :  { %s59_s17 = sshll.u32 %s1170_s16, 4  ;;  %p1112_p10 = scmp.ne.s32.totalorder %s1316_s5, %s1111_s21  ;;  %s60_s17 = int_to_ptr.vmem [resolvable:$true] %s59_s17 }
  0x37   :  { %p1115_p11 = scmp.lt.u32.totalorder %s1111_s21, %s1316_s5 }
  0x39   :  { %p1117_p12 = pnand %p1115_p11, %p1112_p10 }
  0x3b   :  { %1120 = shalt.err (!%p1117_p12)
}
  0x3c   :  { %s1121_s1 = scalar_lea.vmem %s60_s17, 1024  ;;  %p1126_p0 = scmp.lt.s32.totalorder %s60_s17, %s60_s17 }
  0x3d   :  { %p1122_p13 = scmp.ne.s32.totalorder %s60_s17, %s1121_s1  ;;  %p1127_p1 = scmp.lt.s32.totalorder %s1121_s1, %s1121_s1 }
  0x3f   :  { %p1128_p2 = por %p1127_p1, %p1126_p0 }
  0x41   :  { %p1129_p3 = pnand %p1128_p2, %p1122_p13 }
  0x43   :  { %1132 = shalt.err (!%p1129_p3)
}
  0x44   :  { %s1171_s3 = smov 64   ;;  %s1172_s18 = smov 4  }
  0x45   :  { %65 = dma.hbm_to_vmem [thread:$0]  %s1316_s5, 1024, %s60_s17, [#allocation9], %s1171_s3, %s1171_s3, %s1172_s18  }
  0x46   :  { %1155 = dma.done.wait [#allocation3], 64  }
  0x47   :  { %1156 = vsyncadd [#allocation3], 4294967232 }
  0x48   :  { %1157 = dma.done.wait [#allocation6], 8192  }
  0x49   :  { %1158 = vsyncadd [#allocation6], 4294959104 }
  0x4a   :  { %1159 = dma.done.wait [#allocation9], 1024  }
  0x4b   :  { %1160 = vsyncadd [#allocation9], 4294966272  ;;  %v1173_v0 = vmov 0   ;;  %v941_v1 = vld [vmem:[#allocation5 + $0x4] ss:$8 sps:$4 sm:$0xff]   ;;  %v1174_v51 = vmov 0.0   ;;  %v100_v52 = vlaneseq }
  0x4c   :  { %222 = vmatprep.mubr.bf16.mxu0 %v1173_v0  ;;  %587 = vmatprep.mubr.bf16.mxu1 %v1173_v0  ;;  %v943_v2 = vld [vmem:[#allocation5] ss:$8 sps:$4 sm:$0xff]   ;;  %v944_v3 = vld [vmem:[#allocation5 + $0x14] ss:$8 sps:$4 sm:$0xff]   ;;  %v946_v4 = vld [vmem:[#allocation5 + $0x10] ss:$8 sps:$4 sm:$0xff]  }
  0x4d   :  { %190 = vmatprep.subr.bf16.mxu0 %v941_v1  ;;  %v947_v5 = vld [vmem:[#allocation5 + $0x24] ss:$8 sps:$4 sm:$0xff]   ;;  %v949_v6 = vld [vmem:[#allocation5 + $0x20] ss:$8 sps:$4 sm:$0xff]   ;;  %v950_v7 = vld [vmem:[#allocation5 + $0x34] ss:$8 sps:$4 sm:$0xff]  }
  0x4e   :  { %191 = vmatpush1.bf16.msra.mxu0 %v943_v2  ;;  %v952_v8 = vld [vmem:[#allocation5 + $0x30] ss:$8 sps:$4 sm:$0xff]   ;;  %v965_v9 = vld [vmem:[#allocation7 + $0x4] ss:$24 sps:$4 sm:$0xff]   ;;  %v971_v12 = vld [vmem:[#allocation7 + $0x34] ss:$24 sps:$4 sm:$0xff]  }
  0x4f   :  { %192 = vmatprep.subr.bf16.mxu0 %v944_v3  ;;  %v953_v10 = vld [vmem:[#allocation5 + $0x44] ss:$8 sps:$4 sm:$0xff]   ;;  %555 = vmatprep.subr.bf16.mxu1 %v965_v9  ;;  %v970_v11 = vld [vmem:[#allocation7] ss:$24 sps:$4 sm:$0xff]   ;;  %v956_v14 = vld [vmem:[#allocation5 + $0x54] ss:$8 sps:$4 sm:$0xff]  }
  0x50   :  { %v955_v13 = vld [vmem:[#allocation5 + $0x40] ss:$8 sps:$4 sm:$0xff]   ;;  %556 = vmatpush1.bf16.msra.mxu1 %v970_v11  ;;  %v977_v16 = vld [vmem:[#allocation7 + $0x64] ss:$24 sps:$4 sm:$0xff]   ;;  %v958_v17 = vld [vmem:[#allocation5 + $0x50] ss:$8 sps:$4 sm:$0xff]  }
  0x51   :  { %557 = vmatprep.subr.bf16.mxu1 %v971_v12  ;;  %v976_v15 = vld [vmem:[#allocation7 + $0x30] ss:$24 sps:$4 sm:$0xff]   ;;  %v959_v18 = vld [vmem:[#allocation5 + $0x64] ss:$8 sps:$4 sm:$0xff]   ;;  %v982_v19 = vld [vmem:[#allocation7 + $0x60] ss:$24 sps:$4 sm:$0xff]  }
  0x52   :  { %193 = vmatpush1.bf16.msra.mxu0 %v946_v4  ;;  %v983_v20 = vld [vmem:[#allocation7 + $0x94] ss:$24 sps:$4 sm:$0xff]   ;;  %v961_v21 = vld [vmem:[#allocation5 + $0x60] ss:$8 sps:$4 sm:$0xff]   ;;  %v989_v24 = vld [vmem:[#allocation7 + $0xc4] ss:$24 sps:$4 sm:$0xff]  }
  0x53   :  { %194 = vmatprep.subr.bf16.mxu0 %v947_v5  ;;  %v962_v22 = vld [vmem:[#allocation5 + $0x74] ss:$8 sps:$4 sm:$0xff]   ;;  %v988_v23 = vld [vmem:[#allocation7 + $0x90] ss:$24 sps:$4 sm:$0xff]   ;;  %v969_v26 = vld [vmem:[#allocation7 + $0xc] ss:$24 sps:$4 sm:$0xff]  }
  0x54   :  { %558 = vmatpush1.bf16.msra.mxu1 %v976_v15  ;;  %v964_v25 = vld [vmem:[#allocation5 + $0x70] ss:$8 sps:$4 sm:$0xff]   ;;  %v995_v28 = vld [vmem:[#allocation7 + $0xf4] ss:$24 sps:$4 sm:$0xff]   ;;  %v81_v29 = vld [vmem:[#allocation2] sm:$0xf] }
  0x55   :  { %559 = vmatprep.subr.bf16.mxu1 %v977_v16  ;;  %v994_v27 = vld [vmem:[#allocation7 + $0xc0] ss:$24 sps:$4 sm:$0xff]   ;;  %v1000_v31 = vld [vmem:[#allocation7 + $0xf0] ss:$24 sps:$4 sm:$0xff]   ;;  %v975_v32 = vld [vmem:[#allocation7 + $0x3c] ss:$24 sps:$4 sm:$0xff]  }
  0x56   :  { %195 = vmatpush1.bf16.msra.mxu0 %v949_v6  ;;  %v967_v30 = vld [vmem:[#allocation7 + $0x8] ss:$24 sps:$4 sm:$0xff]   ;;  %v1001_v33 = vld [vmem:[#allocation7 + $0x124] ss:$24 sps:$4 sm:$0xff]   ;;  %v973_v34 = vld [vmem:[#allocation7 + $0x38] ss:$24 sps:$4 sm:$0xff]  }
  0x57   :  { %196 = vmatprep.subr.bf16.mxu0 %v950_v7  ;;  %v1006_v35 = vld [vmem:[#allocation7 + $0x120] ss:$24 sps:$4 sm:$0xff]   ;;  %v981_v36 = vld [vmem:[#allocation7 + $0x6c] ss:$24 sps:$4 sm:$0xff]   ;;  %v987_v38 = vld [vmem:[#allocation7 + $0x9c] ss:$24 sps:$4 sm:$0xff]  }
  0x58   :  { %560 = vmatpush1.bf16.msra.mxu1 %v982_v19  ;;  %v979_v37 = vld [vmem:[#allocation7 + $0x68] ss:$24 sps:$4 sm:$0xff]   ;;  %v985_v39 = vld [vmem:[#allocation7 + $0x98] ss:$24 sps:$4 sm:$0xff]   ;;  %v993_v40 = vld [vmem:[#allocation7 + $0xcc] ss:$24 sps:$4 sm:$0xff]  }
  0x59   :  { %561 = vmatprep.subr.bf16.mxu1 %v983_v20  ;;  %v991_v41 = vld [vmem:[#allocation7 + $0xc8] ss:$24 sps:$4 sm:$0xff]   ;;  %v999_v42 = vld [vmem:[#allocation7 + $0xfc] ss:$24 sps:$4 sm:$0xff]   ;;  %v997_v43 = vld [vmem:[#allocation7 + $0xf8] ss:$24 sps:$4 sm:$0xff]  }
  0x5a   :  { %197 = vmatpush1.bf16.msra.mxu0 %v952_v8  ;;  %v1005_v44 = vld [vmem:[#allocation7 + $0x12c] ss:$24 sps:$4 sm:$0xff]   ;;  %v1003_v45 = vld [vmem:[#allocation7 + $0x128] ss:$24 sps:$4 sm:$0xff]   ;;  %v1011_v47 = vld [vmem:[#allocation7 + $0x15c] ss:$24 sps:$4 sm:$0xff]  }
  0x5b   :  { %198 = vmatprep.subr.bf16.mxu0 %v953_v10  ;;  %v1007_v46 = vld [vmem:[#allocation7 + $0x154] ss:$24 sps:$4 sm:$0xff]   ;;  %v1009_v48 = vld [vmem:[#allocation7 + $0x158] ss:$24 sps:$4 sm:$0xff]   ;;  %v1269_v53 = vshrl.u32 %v100_v52, 7  ;;  %v1016_v1 = vld [vmem:[#allocation8] sm:$0xff]  }
  0x5c   :  { %562 = vmatpush1.bf16.msra.mxu1 %v988_v23  ;;  %v1012_v49 = vld [vmem:[#allocation7 + $0x150] ss:$24 sps:$4 sm:$0xff]   ;;  %v1015_v50 = vld [vmem:[#allocation7 + $0x14] ss:$24 sps:$4 sm:$0xff]   ;;  %v1019_v3 = vld [vmem:[#allocation7 + $0x44] ss:$24 sps:$4 sm:$0xff]  }
  0x5d   :  { %563 = vmatprep.subr.bf16.mxu1 %v989_v24  ;;  %v102_v54 = vsub.s32 0, %v1269_v53  ;;  %v98_v55 = vld [vmem:[%s1313_s2] sm:$0x3]  ;;  %v1013_v63 = vld [vmem:[#allocation7 + $0x10] ss:$24 sps:$4 sm:$0xff]   ;;  %vm1175_vm0 = vmmov 0  }
  0x5e   :  { %199 = vmatpush1.bf16.msra.mxu0 %v955_v13  ;;  %v1017_v4 = vld [vmem:[#allocation7 + $0x40] ss:$24 sps:$4 sm:$0xff]   ;;  %v1020_v5 = vld [vmem:[#allocation8 + $0x8] sm:$0xff]   ;;  %v1024_v8 = vld [vmem:[#allocation8 + $0x10] sm:$0xff]   ;;  %s1176_s8 = smov [#allocation10]  }
  0x5f   :  { %200 = vmatprep.subr.bf16.mxu0 %v956_v14  ;;  %v103_v56 = vrot.slane %v98_v55, %v102_v54  ;;  %v1023_v6 = vld [vmem:[#allocation7 + $0x74] ss:$24 sps:$4 sm:$0xff]   ;;  %v1021_v7 = vld [vmem:[#allocation7 + $0x70] ss:$24 sps:$4 sm:$0xff]   ;;  %v1027_v9 = vld [vmem:[#allocation7 + $0xa4] ss:$24 sps:$4 sm:$0xff]  }
  0x60   :  { %564 = vmatpush1.bf16.msra.mxu1 %v994_v27  ;;  %v1025_v10 = vld [vmem:[#allocation7 + $0xa0] ss:$24 sps:$4 sm:$0xff]   ;;  %v1031_v12 = vld [vmem:[#allocation7 + $0xd4] ss:$24 sps:$4 sm:$0xff]   ;;  %v106_v14 = vsub.s32 1, %v1269_v53  ;;  %s814_s9 = sshll.u32 %s1176_s8, 4  ;;  %s815_s9 = int_to_ptr.vmem [resolvable:$true] %s814_s9 }
  0x61   :  { %565 = vmatprep.subr.bf16.mxu1 %v995_v28  ;;  %v1028_v11 = vld [vmem:[#allocation8 + $0x18] sm:$0xff]   ;;  %v1032_v13 = vld [vmem:[#allocation8 + $0x20] sm:$0xff]   ;;  %v1039_v19 = vld [vmem:[#allocation7 + $0x134] ss:$24 sps:$4 sm:$0xff]   ;;  %p1138_p5 = scmp.lt.s32.totalorder %s815_s9, %s815_s9 }
  0x62   :  { %201 = vmatpush1.bf16.msra.mxu0 %v958_v17  ;;  %v1035_v15 = vld [vmem:[#allocation7 + $0x104] ss:$24 sps:$4 sm:$0xff]   ;;  %v1033_v16 = vld [vmem:[#allocation7 + $0x100] ss:$24 sps:$4 sm:$0xff]   ;;  %v1036_v17 = vld [vmem:[#allocation8 + $0x28] sm:$0xff]  }
  0x63   :  { %202 = vmatprep.subr.bf16.mxu0 %v959_v18  ;;  %v107_v18 = vrot.slane %v98_v55, %v106_v14  ;;  %v1037_v20 = vld [vmem:[#allocation7 + $0x130] ss:$24 sps:$4 sm:$0xff]   ;;  %v1043_v23 = vld [vmem:[#allocation7 + $0x164] ss:$24 sps:$4 sm:$0xff]   ;;  %v1041_v24 = vld [vmem:[#allocation7 + $0x160] ss:$24 sps:$4 sm:$0xff]  }
  0x64   :  { %566 = vmatpush1.bf16.msra.mxu1 %v1000_v31  ;;  %v283_v28 = vld [vmem:[%s1315_s4] sm:$0x3f] }
  0x65   :  { %567 = vmatprep.subr.bf16.mxu1 %v1001_v33  ;;  %v292_v31 = vrot.slane %v283_v28, %v106_v14 }
  0x66   :  { %203 = vmatpush1.bf16.msra.mxu0 %v961_v21  ;;  %v1040_v21 = vld [vmem:[#allocation8 + $0x30] sm:$0xff]  }
  0x67   :  { %204 = vmatprep.subr.bf16.mxu0 %v962_v22 }
  0x68   :  { %568 = vmatpush1.bf16.msra.mxu1 %v1006_v35 }
  0x69   :  { %569 = vmatprep.subr.bf16.mxu1 %v1007_v46 }
  0x6a   :  { %205 = vmatpush1.bf16.msra.mxu0 %v964_v25  ;;  %v1044_v25 = vld [vmem:[#allocation8 + $0x38] sm:$0xff]  }
  0x6b   :  { %596 = vmatprep.subr.bf16.mxu0 %v969_v26 }
  0x6c   :  { %570 = vmatpush1.bf16.msra.mxu1 %v1012_v49 }
  0x6d   :  { %223 = vmatmul.mubr.bf16.vlgmr.msra.gmra.mrb[0].mxu0 %v81_v29  ;;  %637 = vmatprep.subr.bf16.mxu1 %v1015_v50  ;;  %v295_v29 = vsub.s32 2, %v1269_v53  ;;  %v303_v50 = vsub.s32 4, %v1269_v53 }
  0x6e   :  { %597 = vmatpush1.bf16.msra.mxu0 %v967_v30  ;;  %628 = vmatprep.mubr.bf16.mxu0 %v1173_v0  ;;  %v288_v30 = vrot.slane %v283_v28, %v102_v54 }
  0x6f   :  { %598 = vmatprep.subr.bf16.mxu0 %v975_v32  ;;  %v299_v32 = vsub.s32 3, %v1269_v53  ;;  %v304_v52 = vrot.slane %v283_v28, %v303_v50 }
  0x72   :  { %599 = vmatpush1.bf16.msra.mxu0 %v973_v34  ;;  %v296_v34 = vrot.slane %v283_v28, %v295_v29 }
  0x73   :  { %600 = vmatprep.subr.bf16.mxu0 %v981_v36 }
  0x76   :  { %601 = vmatpush1.bf16.msra.mxu0 %v979_v37 }
  0x77   :  { %602 = vmatprep.subr.bf16.mxu0 %v987_v38 }
  0x7a   :  { %603 = vmatpush1.bf16.msra.mxu0 %v985_v39 }
  0x7b   :  { %604 = vmatprep.subr.bf16.mxu0 %v993_v40  ;;  %v300_v40 = vrot.slane %v283_v28, %v299_v32 }
  0x7e   :  { %605 = vmatpush1.bf16.msra.mxu0 %v991_v41 }
  0x7f   :  { %606 = vmatprep.subr.bf16.mxu0 %v999_v42 }
  0x82   :  { %607 = vmatpush1.bf16.msra.mxu0 %v997_v43 }
  0x83   :  { %608 = vmatprep.subr.bf16.mxu0 %v1005_v44 }
  0x86   :  { %609 = vmatpush1.bf16.msra.mxu0 %v1003_v45 }
  0x87   :  { %610 = vmatprep.subr.bf16.mxu0 %v1011_v47 }
  0x8a   :  { %611 = vmatpush1.bf16.msra.mxu0 %v1009_v48 }
  0x8b   :  { %907 = vmatprep.subr.bf16.mxu0 %v1174_v51 }
 0x140   :  { %v224_v57 = vpop.f32.mrb[0].mxu0 }
 0x141   :  { %v225_v58 = vadd.f32 %v224_v57, %v103_v56  ;;  %v226_v59 = vpop.f32.mrb[1].mxu0 }
 0x142   :  { %v228_v60 = vpop.f32.mrb[2].mxu0  ;;  %v227_v22 = vadd.f32 %v226_v59, %v107_v18 }
 0x143   :  { %v231_v61 = vmax.f32 %v225_v58, 0.0  ;;  %v229_v62 = vpop.f32.mrb[3].mxu0 }
 0x144   :  { %v232_v26 = vmax.f32 %v227_v22, 0.0 }
 0x145   :  { %v233_v2 = vpack.c.bf16 %v231_v61, %v231_v61 }
 0x146   :  { %v234_v27 = vpack.c.bf16 %v232_v26, %v232_v26 }
 0x147   :  { %588 = vmatmul.mubr.bf16.vlgmr.msra.gmra.mrb[0].mxu1 %v233_v2  ;;  %629 = vmatmul.mubr.bf16.vlgmr.msra.gmra.mrb[4].mxu0 %v233_v2 }
 0x148   :  { %638 = vmatpush1.bf16.msra.mxu1 %v1013_v63  ;;  %908 = vmatpush3.bf16.msra.mxu0 %v1016_v1 }
 0x149   :  { %639 = vmatprep.subr.bf16.mxu1 %v1019_v3  ;;  %909 = vmatprep.subr.bf16.mxu0 %v1174_v51  ;;  %v889_v3 = vld [vmem:[%s1317_s6] ss:$0 sm:$0xff]  ;;  %s1133_s6 = scalar_lea.vmem %s815_s9, 768 }
 0x14a   :  { %669 = vmatprep.mubr.bf16.mxu1 %v1173_v0  ;;  %923 = vmatprep.mubr.msk.bf16.mxu0 %vm1175_vm0, %v1174_v51  ;;  %v1029_v0 = vld [vmem:[#allocation7 + $0xd0] ss:$24 sps:$4 sm:$0xff]   ;;  %p1134_p4 = scmp.ne.s32.totalorder %s815_s9, %s1133_s6  ;;  %p1139_p6 = scmp.lt.s32.totalorder %s1133_s6, %s1133_s6 }
 0x14c   :  { %640 = vmatpush1.bf16.msra.mxu1 %v1017_v4  ;;  %910 = vmatpush3.bf16.msra.mxu0 %v1020_v5  ;;  %p1140_p7 = por %p1139_p6, %p1138_p5 }
 0x14d   :  { %641 = vmatprep.subr.bf16.mxu1 %v1023_v6  ;;  %911 = vmatprep.subr.bf16.mxu0 %v1174_v51 }
 0x14e   :  { %p1141_p8 = pnand %p1140_p7, %p1134_p4 }
 0x150   :  { %642 = vmatpush1.bf16.msra.mxu1 %v1021_v7  ;;  %912 = vmatpush3.bf16.msra.mxu0 %v1024_v8 }
 0x151   :  { %643 = vmatprep.subr.bf16.mxu1 %v1027_v9  ;;  %913 = vmatprep.subr.bf16.mxu0 %v1174_v51 }
 0x154   :  { %644 = vmatpush1.bf16.msra.mxu1 %v1025_v10  ;;  %914 = vmatpush3.bf16.msra.mxu0 %v1028_v11 }
 0x155   :  { %645 = vmatprep.subr.bf16.mxu1 %v1031_v12  ;;  %915 = vmatprep.subr.bf16.mxu0 %v1174_v51 }
 0x158   :  { %646 = vmatpush1.bf16.msra.mxu1 %v1029_v0  ;;  %916 = vmatpush3.bf16.msra.mxu0 %v1032_v13 }
 0x159   :  { %647 = vmatprep.subr.bf16.mxu1 %v1035_v15  ;;  %917 = vmatprep.subr.bf16.mxu0 %v1174_v51 }
 0x15c   :  { %648 = vmatpush1.bf16.msra.mxu1 %v1033_v16  ;;  %918 = vmatpush3.bf16.msra.mxu0 %v1036_v17 }
 0x15d   :  { %649 = vmatprep.subr.bf16.mxu1 %v1039_v19  ;;  %919 = vmatprep.subr.bf16.mxu0 %v1174_v51 }
 0x160   :  { %650 = vmatpush1.bf16.msra.mxu1 %v1037_v20  ;;  %920 = vmatpush3.bf16.msra.mxu0 %v1040_v21 }
 0x161   :  { %651 = vmatprep.subr.bf16.mxu1 %v1043_v23  ;;  %921 = vmatprep.subr.bf16.mxu0 %v1174_v51  ;;  %v307_v51 = vsub.s32 5, %v1269_v53 }
 0x163   :  { %v308_v54 = vrot.slane %v283_v28, %v307_v51 }
 0x164   :  { %652 = vmatpush1.bf16.msra.mxu1 %v1041_v24  ;;  %922 = vmatpush3.bf16.msra.mxu0 %v1044_v25 }
 0x167   :  { %670 = vmatmul.mubr.bf16.vlgmr.msra.gmra.mrb[4].mxu1 %v233_v2  ;;  %924 = vmatmul.mubr.bf16.vlgmr.msra.gmra.mrb[8].mxu0 %v234_v27 }
 0x21a   :  { %v589_v33 = vpop.f32.mrb[0].mxu1  ;;  %v630_v35 = vpop.f32.mrb[4].mxu0 }
 0x21b   :  { %v590_v36 = vadd.f32 %v589_v33, %v288_v30  ;;  %v591_v37 = vpop.f32.mrb[1].mxu1  ;;  %v632_v38 = vpop.f32.mrb[5].mxu0  ;;  %v631_v45 = vadd.f32 %v630_v35, %v296_v34 }
 0x21c   :  { %v592_v39 = vadd.f32 %v591_v37, %v292_v31  ;;  %v593_v41 = vpop.f32.mrb[2].mxu1  ;;  %v634_v42 = vpop.f32.mrb[6].mxu0  ;;  %v633_v47 = vadd.f32 %v632_v38, %v300_v40 }
 0x21d   :  { %v594_v43 = vpop.f32.mrb[3].mxu1  ;;  %v635_v44 = vpop.f32.mrb[7].mxu0 }
 0x21e   :  { %v789_v46 = vadd.f32 %v592_v39, %v590_v36 }
 0x220   :  { %v790_v48 = vadd.f32 %v789_v46, %v631_v45 }
 0x222   :  { %v791_v49 = vadd.f32 %v790_v48, %v633_v47 }
 0x23a   :  { %v671_v55 = vpop.f32.mrb[4].mxu1  ;;  %v783_v56 = vpop.f32.mrb[8].mxu0 }
 0x23b   :  { %v672_v57 = vadd.f32 %v671_v55, %v304_v52  ;;  %v673_v58 = vpop.f32.mrb[5].mxu1  ;;  %v925_v59 = vpop.f32.mrb[9].mxu0  ;;  %v784_v5 = vadd.f32 %v889_v3, %v783_v56 }
 0x23c   :  { %v674_v60 = vadd.f32 %v673_v58, %v308_v54  ;;  %v675_v61 = vpop.f32.mrb[6].mxu1  ;;  %v786_v62 = vpop.f32.mrb[10].mxu0 }
 0x23d   :  { %v792_v63 = vadd.f32 %v791_v49, %v672_v57  ;;  %v676_v1 = vpop.f32.mrb[7].mxu1  ;;  %v926_v2 = vpop.f32.mrb[11].mxu0 }
 0x23f   :  { %v793_v4 = vadd.f32 %v792_v63, %v674_v60 }
 0x241   :  { %v794_v53 = vmul.f32 0.16666667, %v793_v4 }
 0x243   :  { %v795_v6 = vsub.f32 %v784_v5, %v794_v53 }
 0x245   :  { %v801_v7 = vadd.f32 %v795_v6, %v674_v60  ;;  %v796_v8 = vadd.f32 %v795_v6, %v590_v36  ;;  %v797_v9 = vadd.f32 %v795_v6, %v592_v39  ;;  %v798_v10 = vadd.f32 %v795_v6, %v631_v45 }
 0x246   :  { %v799_v11 = vadd.f32 %v795_v6, %v633_v47  ;;  %v800_v12 = vadd.f32 %v795_v6, %v672_v57 }
 0x247   :  { %807 = vst [vmem:[#allocation10 + $0x28] sm:$0xff] %v801_v7  ;;  %802 = vst [vmem:[#allocation10] sm:$0xff] %v796_v8 }
 0x248   :  { %803 = vst [vmem:[#allocation10 + $0x8] sm:$0xff] %v797_v9  ;;  %804 = vst [vmem:[#allocation10 + $0x10] sm:$0xff] %v798_v10 }
 0x249   :  { %805 = vst [vmem:[#allocation10 + $0x18] sm:$0xff] %v799_v11  ;;  %806 = vst [vmem:[#allocation10 + $0x20] sm:$0xff] %v800_v12 }
 0x24a   :  { %1144 = shalt.err (!%p1141_p8)
}
 0x24b   :  { %s1145_s12 = scalar_lea.hbm %s1318_s7, 768 }
 0x24c   :  { %p1146_p9 = scmp.ne.s32.totalorder %s1318_s7, %s1145_s12  ;;  %p1149_p10 = scmp.lt.u32.totalorder %s1145_s12, %s1318_s7 }
 0x24e   :  { %p1151_p11 = pnand %p1149_p10, %p1146_p9 }
 0x250   :  { %1154 = shalt.err (!%p1151_p11)
}
 0x251   :  { %817 = dma.vmem_to_hbm [thread:$0]  %s815_s9, 768, %s1318_s7, [#allocation4]  }
 0x252   :  { %1161 = dma.done.wait [#allocation4], 768  }
 0x253   :  { %1162 = vsyncadd [#allocation4], 4294966528 }
 0x254   :  { %821 = vsyncpa [#allocation3], 1 }
 0x255   :  { %822 = vsyncpa [#allocation6], 1 }
 0x256   :  { %823 = vsyncpa [#allocation9], 1 }
 0x257   :  { %824 = vsyncpa [#allocation4], 1 }

</bundles_post_ra>
